<compile_context>
chip_gen: v7x
topology: tpu7x:2x2x1
jax: 0.10.0
libtpu: 0.0.40
codegen_flags: <defaults>
</compile_context>

<pallas_src>
import math

import jax
import jax.numpy as jnp
from jax.experimental import pallas as pl
from jax.experimental.pallas import tpu as pltpu


_LANE = 1024            # lane-dense last dim (multiple of 128) -> unmasked stores
_MAX_BLOCK_ROWS = 256   # (256, 1024) f32 = 1 MiB per array block
_PAD_GRANULE = 8 * _LANE  # pad flattened length to a multiple of one (8, 1024) tile


def _complex_relu_kernel(real_ref, ii_ref, ij_ref, ik_ref,
                         or_ref, oi_ref, oj_ref, ok_ref):
    real = real_ref[...]
    # mask = 1.0 * (real >= 0), in the inputs' dtype (keeps 0*NaN = NaN like torch).
    mask = (real >= 0).astype(real.dtype)
    or_ref[...] = mask * real
    oi_ref[...] = mask * ii_ref[...]
    oj_ref[...] = mask * ij_ref[...]
    ok_ref[...] = mask * ik_ref[...]


@jax.jit
def complex_relu(real, imag_i, imag_j, imag_k):
    """Fused quaternion complex-ReLU. All inputs share the same shape/dtype."""
    assert real.shape == imag_i.shape == imag_j.shape == imag_k.shape
    assert real.dtype == imag_i.dtype == imag_j.dtype == imag_k.dtype
    orig_shape = real.shape
    dtype = real.dtype

    total = int(math.prod(orig_shape)) if orig_shape else 1
    padded_total = pl.cdiv(total, _PAD_GRANULE) * _PAD_GRANULE
    pad = padded_total - total
    rows = padded_total // _LANE                 # always a multiple of 8
    block_rows = min(_MAX_BLOCK_ROWS, rows)      # multiple of 8, <= rows
    n_blocks = pl.cdiv(rows, block_rows)         # ragged last block OK

    def _prep(x):
        x = x.reshape(-1)
        if pad:
            x = jnp.pad(x, (0, pad))
        return x.reshape(rows, _LANE)

    xs = [_prep(a) for a in (real, imag_i, imag_j, imag_k)]

    spec = pl.BlockSpec((block_rows, _LANE), lambda i: (i, 0))
    out_sd = jax.ShapeDtypeStruct((rows, _LANE), dtype)

    outs = pl.pallas_call(
        _complex_relu_kernel,
        out_shape=(out_sd, out_sd, out_sd, out_sd),
        grid_spec=pltpu.PrefetchScalarGridSpec(
            num_scalar_prefetch=0,
            grid=(n_blocks,),
            in_specs=[spec, spec, spec, spec],
            out_specs=[spec, spec, spec, spec],
        ),
        compiler_params=pltpu.CompilerParams(
            dimension_semantics=("parallel",),
            vmem_limit_bytes=48 * 1024 * 1024,
        ),
    )(*xs)

    def _unprep(y):
        y = y.reshape(-1)
        if pad:
            y = y[:total]
        return y.reshape(orig_shape)

    return tuple(_unprep(y) for y in outs)


if __name__ == "__main__":
    # Small node-feature shapes: 16 nodes, 32 features (matches the module's
    # node-feature-matrix usage).
    key = jax.random.PRNGKey(0)
    k1, k2, k3, k4 = jax.random.split(key, 4)
    N, F = 16, 32
    real = jax.random.normal(k1, (N, F), dtype=jnp.float32)
    imag_i = jax.random.normal(k2, (N, F), dtype=jnp.float32)
    imag_j = jax.random.normal(k3, (N, F), dtype=jnp.float32)
    imag_k = jax.random.normal(k4, (N, F), dtype=jnp.float32)

    out_r, out_i, out_j, out_k = complex_relu(real, imag_i, imag_j, imag_k)
    jax.block_until_ready((out_r, out_i, out_j, out_k))

    # Reference check in plain JAX (same math as the PyTorch module).
    mask = (real >= 0).astype(jnp.float32)
    assert out_r.shape == (N, F)
    assert jnp.allclose(out_r, mask * real)
    assert jnp.allclose(out_i, mask * imag_i)
    assert jnp.allclose(out_j, mask * imag_j)
    assert jnp.allclose(out_k, mask * imag_k)

    # Also exercise the tiled (multi-block, ragged-edge) path once.
    M = 1000, 600  # 600_000 elems -> padded to 73.25 -> 74 tiles of 8x1024
    big = [jax.random.normal(k, M, dtype=jnp.float32) for k in jax.random.split(key, 4)]
    br, bi, bj, bk = complex_relu(*big)
    jax.block_until_ready((br, bi, bj, bk))
    bmask = (big[0] >= 0).astype(jnp.float32)
    assert jnp.allclose(br, bmask * big[0])
    assert jnp.allclose(bk, bmask * big[3])

    print("KERNEL_OK")
</pallas_src>

<mosaic_0001>
module attributes {stable_mosaic.version = 11 : i64} {
  func.func @_complex_relu_kernel(%arg0: i32, %arg1: memref<8x1024xf32, #tpu.memory_space<vmem>>, %arg2: memref<8x1024xf32, #tpu.memory_space<vmem>>, %arg3: memref<8x1024xf32, #tpu.memory_space<vmem>>, %arg4: memref<8x1024xf32, #tpu.memory_space<vmem>>, %arg5: memref<8x1024xf32, #tpu.memory_space<vmem>>, %arg6: memref<8x1024xf32, #tpu.memory_space<vmem>>, %arg7: memref<8x1024xf32, #tpu.memory_space<vmem>>, %arg8: memref<8x1024xf32, #tpu.memory_space<vmem>>) attributes {dimension_semantics = [#tpu.dimension_semantics<parallel>], iteration_bounds = array<i64: 1>, scalar_prefetch = 0 : i64, scratch_operands = 0 : i64, tpu.core_type = #tpu.core_type<tc>, window_params = [{transform_indices = @transform_0, window_bounds = array<i64: 8, 1024>}, {transform_indices = @transform_1, window_bounds = array<i64: 8, 1024>}, {transform_indices = @transform_2, window_bounds = array<i64: 8, 1024>}, {transform_indices = @transform_3, window_bounds = array<i64: 8, 1024>}, {transform_indices = @transform_4, window_bounds = array<i64: 8, 1024>}, {transform_indices = @transform_5, window_bounds = array<i64: 8, 1024>}, {transform_indices = @transform_6, window_bounds = array<i64: 8, 1024>}, {transform_indices = @transform_7, window_bounds = array<i64: 8, 1024>}]} {
    %c0 = arith.constant 0 : index
    %c0_0 = arith.constant 0 : index
    %0 = vector.load %arg1[%c0, %c0_0] : memref<8x1024xf32, #tpu.memory_space<vmem>>, vector<8x1024xf32>
    %cst = arith.constant 0.000000e+00 : f32
    %1 = vector.broadcast %cst : f32 to vector<8x1024xf32>
    %2 = arith.cmpf oge, %0, %1 : vector<8x1024xf32>
    %3 = arith.extui %2 : vector<8x1024xi1> to vector<8x1024xi32>
    %4 = arith.sitofp %3 : vector<8x1024xi32> to vector<8x1024xf32>
    %5 = arith.mulf %4, %0 : vector<8x1024xf32>
    %c0_1 = arith.constant 0 : index
    %c0_2 = arith.constant 0 : index
    %6 = vector.load %arg5[%c0_1, %c0_2] : memref<8x1024xf32, #tpu.memory_space<vmem>>, vector<8x1024xf32>
    tpu.vector_store %arg5[%c0_1, %c0_2], %5 {strides = array<i32>} : memref<8x1024xf32, #tpu.memory_space<vmem>>, vector<8x1024xf32>,
    %c0_3 = arith.constant 0 : index
    %c0_4 = arith.constant 0 : index
    %7 = vector.load %arg2[%c0_3, %c0_4] : memref<8x1024xf32, #tpu.memory_space<vmem>>, vector<8x1024xf32>
    %8 = arith.mulf %4, %7 : vector<8x1024xf32>
    %c0_5 = arith.constant 0 : index
    %c0_6 = arith.constant 0 : index
    %9 = vector.load %arg6[%c0_5, %c0_6] : memref<8x1024xf32, #tpu.memory_space<vmem>>, vector<8x1024xf32>
    tpu.vector_store %arg6[%c0_5, %c0_6], %8 {strides = array<i32>} : memref<8x1024xf32, #tpu.memory_space<vmem>>, vector<8x1024xf32>,
    %c0_7 = arith.constant 0 : index
    %c0_8 = arith.constant 0 : index
    %10 = vector.load %arg3[%c0_7, %c0_8] : memref<8x1024xf32, #tpu.memory_space<vmem>>, vector<8x1024xf32>
    %11 = arith.mulf %4, %10 : vector<8x1024xf32>
    %c0_9 = arith.constant 0 : index
    %c0_10 = arith.constant 0 : index
    %12 = vector.load %arg7[%c0_9, %c0_10] : memref<8x1024xf32, #tpu.memory_space<vmem>>, vector<8x1024xf32>
    tpu.vector_store %arg7[%c0_9, %c0_10], %11 {strides = array<i32>} : memref<8x1024xf32, #tpu.memory_space<vmem>>, vector<8x1024xf32>,
    %c0_11 = arith.constant 0 : index
    %c0_12 = arith.constant 0 : index
    %13 = vector.load %arg4[%c0_11, %c0_12] : memref<8x1024xf32, #tpu.memory_space<vmem>>, vector<8x1024xf32>
    %14 = arith.mulf %4, %13 : vector<8x1024xf32>
    %c0_13 = arith.constant 0 : index
    %c0_14 = arith.constant 0 : index
    %15 = vector.load %arg8[%c0_13, %c0_14] : memref<8x1024xf32, #tpu.memory_space<vmem>>, vector<8x1024xf32>
    tpu.vector_store %arg8[%c0_13, %c0_14], %14 {strides = array<i32>} : memref<8x1024xf32, #tpu.memory_space<vmem>>, vector<8x1024xf32>,
    return
  }
  func.func @transform_0(%arg0: i32) -> (i32, i32) {
    %c0_i32 = arith.constant 0 : i32
    %c0_i32_0 = arith.constant 0 : i32
    return %arg0, %c0_i32 : i32, i32
  }
  func.func @transform_1(%arg0: i32) -> (i32, i32) {
    %c0_i32 = arith.constant 0 : i32
    %c0_i32_0 = arith.constant 0 : i32
    return %arg0, %c0_i32 : i32, i32
  }
  func.func @transform_2(%arg0: i32) -> (i32, i32) {
    %c0_i32 = arith.constant 0 : i32
    %c0_i32_0 = arith.constant 0 : i32
    return %arg0, %c0_i32 : i32, i32
  }
  func.func @transform_3(%arg0: i32) -> (i32, i32) {
    %c0_i32 = arith.constant 0 : i32
    %c0_i32_0 = arith.constant 0 : i32
    return %arg0, %c0_i32 : i32, i32
  }
  func.func @transform_4(%arg0: i32) -> (i32, i32) {
    %c0_i32 = arith.constant 0 : i32
    %c0_i32_0 = arith.constant 0 : i32
    return %arg0, %c0_i32 : i32, i32
  }
  func.func @transform_5(%arg0: i32) -> (i32, i32) {
    %c0_i32 = arith.constant 0 : i32
    %c0_i32_0 = arith.constant 0 : i32
    return %arg0, %c0_i32 : i32, i32
  }
  func.func @transform_6(%arg0: i32) -> (i32, i32) {
    %c0_i32 = arith.constant 0 : i32
    %c0_i32_0 = arith.constant 0 : i32
    return %arg0, %c0_i32 : i32, i32
  }
  func.func @transform_7(%arg0: i32) -> (i32, i32) {
    %c0_i32 = arith.constant 0 : i32
    %c0_i32_0 = arith.constant 0 : i32
    return %arg0, %c0_i32 : i32, i32
  }
}

</mosaic_0001>

<bundles_post_ra>
// kernel: complex_relu.1
= control target key start
LH: loop header
LB: loop body
LE: loop exit
PB: predicated region body
PF: predicated region fallthrough
CT: control target
= control target key end

     0   :  { %v166_v6 = vmov 0.0   ;;  %s447_s0 = inlined_call_operand.vmem [shape: f32[8,1024], index: 0, kind: input, shape index: {}]   ;;  %s448_s1 = inlined_call_operand.vmem [shape: f32[8,1024], index: 1, kind: input, shape index: {}]   ;;  %s449_s4 = inlined_call_operand.vmem [shape: f32[8,1024], index: 4, kind: output, shape index: {0}]   ;;  %s450_s2 = inlined_call_operand.vmem [shape: f32[8,1024], index: 2, kind: input, shape index: {}]   ;;  %s451_s3 = inlined_call_operand.vmem [shape: f32[8,1024], index: 3, kind: input, shape index: {}]   ;;  %s452_s5 = inlined_call_operand.vmem [shape: f32[8,1024], index: 5, kind: output, shape index: {1}]   ;;  %s453_s6 = inlined_call_operand.vmem [shape: f32[8,1024], index: 6, kind: output, shape index: {2}]   ;;  %s454_s7 = inlined_call_operand.vmem [shape: f32[8,1024], index: 7, kind: output, shape index: {3}]  }
   0x1   :  { %v21_v0 = vld [vmem:[%s447_s0] sm:$0xff]  ;;  %v22_v1 = vld [vmem:[%s447_s0 + $0x8] sm:$0xff]  ;;  %v23_v2 = vld [vmem:[%s447_s0 + $0x10] sm:$0xff] }
   0x2   :  { %vm29_vm0 = vcmp.ge.f32.partialorder %v21_v0, 0.0  ;;  %vm30_vm1 = vcmp.ge.f32.partialorder %v22_v1, 0.0  ;;  %vm31_vm2 = vcmp.ge.f32.partialorder %v23_v2, 0.0  ;;  %v24_v3 = vld [vmem:[%s447_s0 + $0x18] sm:$0xff]  ;;  %v25_v4 = vld [vmem:[%s447_s0 + $0x20] sm:$0xff]  ;;  %v26_v5 = vld [vmem:[%s447_s0 + $0x28] sm:$0xff] }
   0x3   :  { %v225_v7 = vsel %vm29_vm0, 1.0, %v166_v6  ;;  %v227_v8 = vsel %vm30_vm1, 1.0, %v166_v6  ;;  %v229_v9 = vsel %vm31_vm2, 1.0, %v166_v6  ;;  %vm32_vm3 = vcmp.ge.f32.partialorder %v24_v3, 0.0  ;;  %v27_v10 = vld [vmem:[%s447_s0 + $0x30] sm:$0xff]  ;;  %v28_v11 = vld [vmem:[%s447_s0 + $0x38] sm:$0xff] }
   0x4   :  { %v53_v12 = vmul.f32 %v225_v7, %v21_v0  ;;  %v54_v13 = vmul.f32 %v227_v8, %v22_v1  ;;  %v55_v14 = vmul.f32 %v229_v9, %v23_v2  ;;  %v240_v15 = vsel %vm32_vm3, 1.0, %v166_v6  ;;  %v69_v16 = vld [vmem:[%s448_s1] sm:$0xff]  ;;  %v70_v17 = vld [vmem:[%s448_s1 + $0x8] sm:$0xff]  ;;  %v71_v18 = vld [vmem:[%s448_s1 + $0x10] sm:$0xff] }
   0x5   :  { %v56_v19 = vmul.f32 %v240_v15, %v24_v3  ;;  %vm33_vm4 = vcmp.ge.f32.partialorder %v25_v4, 0.0  ;;  %vm34_vm5 = vcmp.ge.f32.partialorder %v26_v5, 0.0  ;;  %vm35_vm6 = vcmp.ge.f32.partialorder %v27_v10, 0.0  ;;  %v72_v20 = vld [vmem:[%s448_s1 + $0x18] sm:$0xff]  ;;  %v73_v21 = vld [vmem:[%s448_s1 + $0x20] sm:$0xff]  ;;  %v74_v22 = vld [vmem:[%s448_s1 + $0x28] sm:$0xff] }
   0x6   :  { %61 = vst [vmem:[%s449_s4] sm:$0xff] %v53_v12  ;;  %62 = vst [vmem:[%s449_s4 + $0x8] sm:$0xff] %v54_v13  ;;  %v270_v23 = vsel %vm33_vm4, 1.0, %v166_v6  ;;  %v272_v24 = vsel %vm34_vm5, 1.0, %v166_v6  ;;  %v274_v25 = vsel %vm35_vm6, 1.0, %v166_v6  ;;  %vm36_vm7 = vcmp.ge.f32.partialorder %v28_v11, 0.0  ;;  %v75_v26 = vld [vmem:[%s448_s1 + $0x30] sm:$0xff] }
   0x7   :  { %63 = vst [vmem:[%s449_s4 + $0x10] sm:$0xff] %v55_v14  ;;  %v76_v27 = vld [vmem:[%s448_s1 + $0x38] sm:$0xff]  ;;  %64 = vst [vmem:[%s449_s4 + $0x18] sm:$0xff] %v56_v19  ;;  %v57_v28 = vmul.f32 %v270_v23, %v25_v4  ;;  %v58_v29 = vmul.f32 %v272_v24, %v26_v5  ;;  %v59_v30 = vmul.f32 %v274_v25, %v27_v10  ;;  %v288_v31 = vsel %vm36_vm7, 1.0, %v166_v6  ;;  %v93_v32 = vld [vmem:[%s450_s2] sm:$0xff] }
   0x8   :  { %v94_v33 = vld [vmem:[%s450_s2 + $0x8] sm:$0xff]  ;;  %v95_v34 = vld [vmem:[%s450_s2 + $0x10] sm:$0xff]  ;;  %v60_v35 = vmul.f32 %v288_v31, %v28_v11  ;;  %v77_v36 = vmul.f32 %v225_v7, %v69_v16  ;;  %v78_v37 = vmul.f32 %v227_v8, %v70_v17  ;;  %v79_v38 = vmul.f32 %v229_v9, %v71_v18  ;;  %v96_v39 = vld [vmem:[%s450_s2 + $0x18] sm:$0xff] }
   0x9   :  { %v97_v40 = vld [vmem:[%s450_s2 + $0x20] sm:$0xff]  ;;  %v98_v41 = vld [vmem:[%s450_s2 + $0x28] sm:$0xff]  ;;  %65 = vst [vmem:[%s449_s4 + $0x20] sm:$0xff] %v57_v28  ;;  %66 = vst [vmem:[%s449_s4 + $0x28] sm:$0xff] %v58_v29  ;;  %v80_v42 = vmul.f32 %v240_v15, %v72_v20  ;;  %v81_v43 = vmul.f32 %v270_v23, %v73_v21  ;;  %v82_v44 = vmul.f32 %v272_v24, %v74_v22 }
   0xa   :  { %67 = vst [vmem:[%s449_s4 + $0x30] sm:$0xff] %v59_v30  ;;  %v83_v45 = vmul.f32 %v274_v25, %v75_v26  ;;  %v99_v46 = vld [vmem:[%s450_s2 + $0x30] sm:$0xff]  ;;  %v100_v47 = vld [vmem:[%s450_s2 + $0x38] sm:$0xff]  ;;  %v117_v48 = vld [vmem:[%s451_s3] sm:$0xff]  ;;  %v84_v49 = vmul.f32 %v288_v31, %v76_v27  ;;  %v101_v50 = vmul.f32 %v225_v7, %v93_v32  ;;  %v102_v51 = vmul.f32 %v227_v8, %v94_v33 }
   0xb   :  { %68 = vst [vmem:[%s449_s4 + $0x38] sm:$0xff] %v60_v35  ;;  %85 = vst [vmem:[%s452_s5] sm:$0xff] %v77_v36  ;;  %v103_v52 = vmul.f32 %v229_v9, %v95_v34  ;;  %v118_v53 = vld [vmem:[%s451_s3 + $0x8] sm:$0xff]  ;;  %v119_v54 = vld [vmem:[%s451_s3 + $0x10] sm:$0xff]  ;;  %v104_v56 = vmul.f32 %v240_v15, %v96_v39  ;;  %v105_v57 = vmul.f32 %v270_v23, %v97_v40 }
   0xc   :  { %86 = vst [vmem:[%s452_s5 + $0x8] sm:$0xff] %v78_v37  ;;  %87 = vst [vmem:[%s452_s5 + $0x10] sm:$0xff] %v79_v38  ;;  %v120_v55 = vld [vmem:[%s451_s3 + $0x18] sm:$0xff]  ;;  %v106_v58 = vmul.f32 %v272_v24, %v98_v41  ;;  %v107_v59 = vmul.f32 %v274_v25, %v99_v46  ;;  %v121_v60 = vld [vmem:[%s451_s3 + $0x20] sm:$0xff]  ;;  %v108_v63 = vmul.f32 %v288_v31, %v100_v47 }
   0xd   :  { %88 = vst [vmem:[%s452_s5 + $0x18] sm:$0xff] %v80_v42  ;;  %89 = vst [vmem:[%s452_s5 + $0x20] sm:$0xff] %v81_v43  ;;  %v122_v61 = vld [vmem:[%s451_s3 + $0x28] sm:$0xff]  ;;  %v123_v62 = vld [vmem:[%s451_s3 + $0x30] sm:$0xff]  ;;  %v125_v0 = vmul.f32 %v225_v7, %v117_v48  ;;  %v126_v1 = vmul.f32 %v227_v8, %v118_v53  ;;  %v127_v2 = vmul.f32 %v229_v9, %v119_v54 }
   0xe   :  { %90 = vst [vmem:[%s452_s5 + $0x28] sm:$0xff] %v82_v44  ;;  %91 = vst [vmem:[%s452_s5 + $0x30] sm:$0xff] %v83_v45  ;;  %v124_v3 = vld [vmem:[%s451_s3 + $0x38] sm:$0xff]  ;;  %v128_v4 = vmul.f32 %v240_v15, %v120_v55  ;;  %v129_v5 = vmul.f32 %v270_v23, %v121_v60  ;;  %v130_v6 = vmul.f32 %v272_v24, %v122_v61 }
   0xf   :  { %92 = vst [vmem:[%s452_s5 + $0x38] sm:$0xff] %v84_v49  ;;  %109 = vst [vmem:[%s453_s6] sm:$0xff] %v101_v50  ;;  %v131_v7 = vmul.f32 %v274_v25, %v123_v62  ;;  %v132_v8 = vmul.f32 %v288_v31, %v124_v3 }
  0x10   :  { %110 = vst [vmem:[%s453_s6 + $0x8] sm:$0xff] %v102_v51  ;;  %111 = vst [vmem:[%s453_s6 + $0x10] sm:$0xff] %v103_v52 }
  0x11   :  { %112 = vst [vmem:[%s453_s6 + $0x18] sm:$0xff] %v104_v56  ;;  %113 = vst [vmem:[%s453_s6 + $0x20] sm:$0xff] %v105_v57 }
  0x12   :  { %114 = vst [vmem:[%s453_s6 + $0x28] sm:$0xff] %v106_v58  ;;  %115 = vst [vmem:[%s453_s6 + $0x30] sm:$0xff] %v107_v59 }
  0x13   :  { %116 = vst [vmem:[%s453_s6 + $0x38] sm:$0xff] %v108_v63  ;;  %133 = vst [vmem:[%s454_s7] sm:$0xff] %v125_v0 }
  0x14   :  { %134 = vst [vmem:[%s454_s7 + $0x8] sm:$0xff] %v126_v1  ;;  %135 = vst [vmem:[%s454_s7 + $0x10] sm:$0xff] %v127_v2 }
  0x15   :  { %136 = vst [vmem:[%s454_s7 + $0x18] sm:$0xff] %v128_v4  ;;  %137 = vst [vmem:[%s454_s7 + $0x20] sm:$0xff] %v129_v5 }
  0x16   :  { %138 = vst [vmem:[%s454_s7 + $0x28] sm:$0xff] %v130_v6  ;;  %139 = vst [vmem:[%s454_s7 + $0x30] sm:$0xff] %v131_v7 }
  0x17   :  { %140 = vst [vmem:[%s454_s7 + $0x38] sm:$0xff] %v132_v8 }

</bundles_post_ra>
